<compile_context>
chip_gen: v6e
topology: v6e:2x2x1
jax: 0.10.0
libtpu: 0.0.40
codegen_flags: <defaults>
</compile_context>

<pallas_src>
import functools

import jax
import jax.numpy as jnp
from jax import lax
from jax.experimental import pallas as pl
from jax.experimental.pallas import tpu as pltpu

_LANE = 128      # vreg lane count   (last-dim tiling unit)
_SUBLANE = 8     # vreg sublane count (second-minor tiling unit)


def _round_up(x, m):
    return ((x + m - 1) // m) * m


def _linear_kernel(x_ref, w_ref, b_ref, o_ref, *, d_total, tk):
    """Grid point (i, k): accumulate feature chunk k of batch tile i.

    x_ref: (TB, TK) VMEM  streamed / double-buffered x tile
    w_ref: (1, TK)  VMEM  weight chunk (resident when nk == 1)
    b_ref: (1, 1)   SMEM  bias scalar
    o_ref: (TB, 1)  VMEM  output block, revisited (accumulated) across k
    """
    k = pl.program_id(1)

    @pl.when(k == 0)
    def _init():
        o_ref[...] = jnp.zeros_like(o_ref)

    x = x_ref[...].astype(jnp.float32)          # (TB, TK)
    w = w_ref[...].astype(jnp.float32)          # (1, TK), broadcast over sublanes
    prod = x * w                                # VPU elementwise
    if d_total % tk != 0:
        # Ragged last feature chunk: select 0 for lanes past D so garbage in
        # the padded region never reaches the accumulator.
        col = lax.broadcasted_iota(jnp.int32, prod.shape, 1) + k * tk
        prod = jnp.where(col < d_total, prod, jnp.float32(0.0))
    # XLU lane reduction; fully hidden under the HBM stream (read-bound kernel).
    o_ref[...] += jnp.sum(prod, axis=-1, keepdims=True)

    @pl.when(k == pl.num_programs(1) - 1)
    def _finalize():
        o_ref[...] += b_ref[0, 0]


def _plan(batch, feat, x_itemsize):
    """Pick (TB, TK, nb, nk, vmem_limit) with honest VMEM accounting."""
    # Physical VMEM per TensorCore: 128 MiB (v5e/v6e), 64 MiB (v7x).
    try:
        vmem_phys = pltpu.get_tpu_info().vmem_capacity_bytes
    except Exception:
        vmem_phys = 64 * 1024 * 1024                     # conservative (v7x)
    vmem_limit = min(vmem_phys // 2, 64 * 1024 * 1024)   # 64 MiB v5e/v6e, 32 MiB v7x
    budget = (vmem_limit * 3) // 4                       # headroom for internals

    # Per-block VMEM cost:
    #   x   (TB, TK): TB*TK*itemsize            x2 buffers
    #   w   (1, TK) : sublane-padded (8, TK) f32 x2 buffers
    #   out (TB, 1) : lane-padded (TB, 128) f32  x2 buffers
    out_row_bytes = 2 * _LANE * 4                        # both out buffers, per row

    def max_rows(tk):
        fixed = 2 * _SUBLANE * tk * 4
        per_row = 2 * tk * x_itemsize + out_row_bytes
        return max(0, (budget - fixed) // per_row)

    # --- feature (K) tile ---------------------------------------------------
    tk = feat
    nk = 1
    if max_rows(tk) < min(batch, 256):
        # D too wide for a resident weight + a reasonable batch tile: stream
        # features along a trailing "arbitrary" axis.  Largest lane-aligned TK
        # that still allows ~512-row batch tiles.
        rows_target = 512
        tk = (budget - rows_target * out_row_bytes) // (
            rows_target * 2 * x_itemsize + 2 * _SUBLANE * 4)
        tk = max(_LANE, (tk // _LANE) * _LANE)
        tk = min(tk, _round_up(feat, _LANE))
        nk = pl.cdiv(feat, tk)

    # --- batch (M) tile -----------------------------------------------------
    rows_fit = max_rows(tk)
    # Aim for >= ~8 independent batch tiles when B is large so v7x's two
    # TensorCores both get work, but never drop below ~1 MiB of x per tile
    # (keeps the ~0.35 us per-step overhead amortized).
    min_rows = _round_up(max(_SUBLANE, (1 << 20) // max(1, tk * x_itemsize)),
                         _SUBLANE)
    want = _round_up(pl.cdiv(batch, 8), _SUBLANE)
    tb = min(rows_fit, max(want, min_rows))
    if tb >= batch:
        tb = batch                                       # single block: always legal
    else:
        tb = max(_SUBLANE, (tb // _SUBLANE) * _SUBLANE)  # sublane-aligned tile
    nb = pl.cdiv(batch, tb)
    return tb, tk, nb, nk, vmem_limit


def linear_model(x, weight, bias):
    """Forward pass of LinearModel (nn.Linear(input_dim, 1)).

    x:      (batch, input_dim) float32 (or bfloat16)
    weight: (1, input_dim)              (nn.Linear weight layout)
    bias:   (1,)
    returns (batch, 1) float32
    """
    B, D = x.shape
    assert weight.shape == (1, D)

    x_itemsize = jnp.dtype(x.dtype).itemsize
    tb, tk, nb, nk, vmem_limit = _plan(B, D, x_itemsize)

    b2d = bias.reshape(1, 1).astype(jnp.float32)

    cost = pl.CostEstimate(
        flops=2 * B * D,
        transcendentals=0,
        bytes_accessed=(B * D * x_itemsize
                        + D * jnp.dtype(weight.dtype).itemsize
                        + B * 4 + 4),
    )

    kernel = functools.partial(_linear_kernel, d_total=D, tk=tk)

    return pl.pallas_call(
        kernel,
        out_shape=jax.ShapeDtypeStruct((B, 1), jnp.float32),
        grid=(nb, nk),
        in_specs=[
            # x: streamed over batch and (if nk > 1) feature chunks.
            pl.BlockSpec((tb, tk), lambda i, k: (i, k)),
            # weight: constant batch index; resident when nk == 1, streamed else.
            pl.BlockSpec((1, tk), lambda i, k: (0, k)),
            # bias: single scalar in SMEM (no VMEM DMA / vector-load slot used).
            pl.BlockSpec((1, 1), lambda i, k: (0, 0),
                         memory_space=pltpu.MemorySpace.SMEM),
        ],
        # Output block revisited across k (accumulator); constant index over k.
        out_specs=pl.BlockSpec((tb, 1), lambda i, k: (i, 0)),
        compiler_params=pltpu.CompilerParams(
            dimension_semantics=("parallel", "arbitrary"),
            vmem_limit_bytes=int(vmem_limit),
        ),
        cost_estimate=cost,
    )(x, weight, b2d)


if __name__ == "__main__":
    key = jax.random.PRNGKey(0)
    kx, kw, kb = jax.random.split(key, 3)

    batch, input_dim = 8, 32

    x = jax.random.normal(kx, (batch, input_dim), dtype=jnp.float32)
    # Deterministic parameter init (mimics nn.Linear uniform(-1/sqrt(D), 1/sqrt(D)))
    bound = 1.0 / jnp.sqrt(jnp.float32(input_dim))
    weight = jax.random.uniform(kw, (1, input_dim), minval=-bound, maxval=bound,
                                dtype=jnp.float32)
    bias = jax.random.uniform(kb, (1,), minval=-bound, maxval=bound,
                              dtype=jnp.float32)

    out = jax.block_until_ready(linear_model(x, weight, bias))

    # Reference check in plain JAX
    ref = x @ weight.T + bias
    assert out.shape == (batch, 1)
    assert jnp.allclose(out, ref, atol=1e-5, rtol=1e-5)

    print("KERNEL_OK")
</pallas_src>

<mosaic_0001>
module attributes {stable_mosaic.version = 11 : i64} {
  func.func @_linear_kernel(%arg0: i32, %arg1: i32, %arg2: memref<8x32xf32, #tpu.memory_space<vmem>>, %arg3: memref<1x32xf32, #tpu.memory_space<vmem>>, %arg4: memref<1x1xf32, #tpu.memory_space<smem>>, %arg5: memref<8x1xf32, #tpu.memory_space<vmem>>) attributes {dimension_semantics = [#tpu.dimension_semantics<parallel>, #tpu.dimension_semantics<arbitrary>], iteration_bounds = array<i64: 1, 1>, scalar_prefetch = 0 : i64, scratch_operands = 0 : i64, tpu.core_type = #tpu.core_type<tc>, window_params = [{transform_indices = @transform_0, window_bounds = array<i64: 8, 32>}, {transform_indices = @transform_1, window_bounds = array<i64: 1, 32>}, {transform_indices = @transform_2, window_bounds = array<i64: 1, 1>}, {transform_indices = @transform_3, window_bounds = array<i64: 8, 1>}]} {
    %c0_i32 = arith.constant 0 : i32
    %0 = arith.cmpi eq, %arg1, %c0_i32 : i32
    %1 = arith.extui %0 : i1 to i32
    %c0_i32_0 = arith.constant 0 : i32
    %2 = arith.cmpi ne, %1, %c0_i32_0 : i32
    scf.if %2 {
      %cst_10 = arith.constant 0.000000e+00 : f32
      %15 = vector.broadcast %cst_10 : f32 to vector<8x1xf32>
      %c0_11 = arith.constant 0 : index
      %c0_12 = arith.constant 0 : index
      %16 = vector.load %arg5[%c0_11, %c0_12] : memref<8x1xf32, #tpu.memory_space<vmem>>, vector<8x1xf32>
      tpu.vector_store %arg5[%c0_11, %c0_12], %15 {strides = array<i32>} : memref<8x1xf32, #tpu.memory_space<vmem>>, vector<8x1xf32>,
    } else {
    }
    %c0 = arith.constant 0 : index
    %c0_1 = arith.constant 0 : index
    %3 = vector.load %arg2[%c0, %c0_1] : memref<8x32xf32, #tpu.memory_space<vmem>>, vector<8x32xf32>
    %c0_2 = arith.constant 0 : index
    %c0_3 = arith.constant 0 : index
    %4 = vector.load %arg3[%c0_2, %c0_3] : memref<1x32xf32, #tpu.memory_space<vmem>>, vector<1x32xf32>
    %5 = vector.broadcast %4 : vector<1x32xf32> to vector<8x32xf32>
    %6 = arith.mulf %3, %5 : vector<8x32xf32>
    %c0_4 = arith.constant 0 : index
    %c0_5 = arith.constant 0 : index
    %7 = vector.load %arg5[%c0_4, %c0_5] : memref<8x1xf32, #tpu.memory_space<vmem>>, vector<8x1xf32>
    %cst = arith.constant dense<0.000000e+00> : vector<8xf32>
    %8 = vector.multi_reduction <add>, %6, %cst [1] : vector<8x32xf32> to vector<8xf32>
    %9 = vector.shape_cast %8 : vector<8xf32> to vector<8x1xf32>
    %10 = arith.addf %7, %9 : vector<8x1xf32>
    %c0_6 = arith.constant 0 : index
    %c0_7 = arith.constant 0 : index
    %11 = vector.load %arg5[%c0_6, %c0_7] : memref<8x1xf32, #tpu.memory_space<vmem>>, vector<8x1xf32>
    tpu.vector_store %arg5[%c0_6, %c0_7], %10 {strides = array<i32>} : memref<8x1xf32, #tpu.memory_space<vmem>>, vector<8x1xf32>,
    %c0_i32_8 = arith.constant 0 : i32
    %12 = arith.cmpi eq, %arg1, %c0_i32_8 : i32
    %13 = arith.extui %12 : i1 to i32
    %c0_i32_9 = arith.constant 0 : i32
    %14 = arith.cmpi ne, %13, %c0_i32_9 : i32
    scf.if %14 {
      %c0_10 = arith.constant 0 : index
      %c0_11 = arith.constant 0 : index
      %15 = vector.load %arg5[%c0_10, %c0_11] : memref<8x1xf32, #tpu.memory_space<vmem>>, vector<8x1xf32>
      %c0_12 = arith.constant 0 : index
      %c0_13 = arith.constant 0 : index
      %16 = memref.load %arg4[%c0_12, %c0_13] : memref<1x1xf32, #tpu.memory_space<smem>>
      %17 = vector.broadcast %16 : f32 to vector<8x1xf32>
      %18 = arith.addf %15, %17 : vector<8x1xf32>
      %c0_14 = arith.constant 0 : index
      %c0_15 = arith.constant 0 : index
      %19 = vector.load %arg5[%c0_14, %c0_15] : memref<8x1xf32, #tpu.memory_space<vmem>>, vector<8x1xf32>
      tpu.vector_store %arg5[%c0_14, %c0_15], %18 {strides = array<i32>} : memref<8x1xf32, #tpu.memory_space<vmem>>, vector<8x1xf32>,
    } else {
    }
    return
  }
  func.func @transform_0(%arg0: i32, %arg1: i32) -> (i32, i32) {
    %c0_i32 = arith.constant 0 : i32
    return %arg0, %arg1 : i32, i32
  }
  func.func @transform_1(%arg0: i32, %arg1: i32) -> (i32, i32) {
    %c0_i32 = arith.constant 0 : i32
    %c0_i32_0 = arith.constant 0 : i32
    return %c0_i32, %arg1 : i32, i32
  }
  func.func @transform_2(%arg0: i32, %arg1: i32) -> (i32, i32) {
    %c0_i32 = arith.constant 0 : i32
    %c0_i32_0 = arith.constant 0 : i32
    %c0_i32_1 = arith.constant 0 : i32
    return %c0_i32, %c0_i32_0 : i32, i32
  }
  func.func @transform_3(%arg0: i32, %arg1: i32) -> (i32, i32) {
    %c0_i32 = arith.constant 0 : i32
    %c0_i32_0 = arith.constant 0 : i32
    return %arg0, %c0_i32 : i32, i32
  }
}

</mosaic_0001>

<bundles_post_ra>
// kernel: tpu_custom_call.1
= control target key start
LH: loop header
LB: loop body
LE: loop exit
PB: predicated region body
PF: predicated region fallthrough
CT: control target
= control target key end

     0   :  { %9 = vsyncpa [#allocation4], 0  ;;  %s88_s12 = smov [#allocation3]   ;;  %s137_s0 = inlined_call_operand.hbm [shape: f32[8,32], index: 0, kind: input, shape index: {}]   ;;  %s138_s1 = inlined_call_operand.vmem [shape: f32[1,32], index: 1, kind: input, shape index: {}]   ;;  %s139_s2 = inlined_call_operand.<no memory space> [shape: f32[1,1], index: 2, kind: input, shape index: {}]   ;;  %s140_s3 = inlined_call_operand.vmem [shape: f32[8,1], index: 3, kind: output, shape index: {}]  }
   0x1   :  { %s16_s13 = sshll.u32 %s88_s12, 4  ;;  %s17_s13 = int_to_ptr.vmem [resolvable:$true] %s16_s13 }
   0x2   :  { %s74_s14 = scalar_lea.vmem %s17_s13, 128  ;;  %p79_p1 = scmp.lt.s32.totalorder %s17_s13, %s17_s13 }
   0x3   :  { %p75_p0 = scmp.ne.s32.totalorder %s17_s13, %s74_s14  ;;  %p80_p2 = scmp.lt.s32.totalorder %s74_s14, %s74_s14 }
   0x5   :  { %p81_p3 = por %p80_p2, %p79_p1 }
   0x7   :  { %p82_p4 = pnand %p81_p3, %p75_p0 }
   0x9   :  { %85 = shalt.err (!%p82_p4)
}
   0xa   :  { %19 = dma.hbm_to_vmem [thread:$0]  %s137_s0, 128, %s17_s13, [#allocation4]  }
   0xb   :  { %86 = dma.done.wait [#allocation4], 128  }
   0xc   :  { %87 = vsyncadd [#allocation4], 4294967168  ;;  %vm31_vm0 = vcmask 7168   ;;  %v89_v0 = vmov 0.0   ;;  %v33_v1 = vld [vmem:[#allocation3] sm:$0xff]  ;;  %vm43_vm1 = vcmask 261120   ;;  %v55_v8 = vstv %s139_s2 }
   0xd   :  { %32 = vst.msk [vmem:[%s140_s3] sm:$0xff] %vm31_vm0, %v89_v0  ;;  %v63_v2 = vld [vmem:[%s138_s1] ss:$0 sm:$0xff] }
   0xe   :  { %v41_v3 = vmul.f32 %v63_v2, %v33_v1 }
  0x10   :  { %v44_v4 = vsel %vm43_vm1, %v41_v3, 0.0 }
  0x11   :  { %45 = vadd.xlane.f32.xlu0 %v44_v4 }
  0x14   :  { %v42_v5 = vld [vmem:[%s140_s3] sm:$0xff] }
  0x9a   :  { %v46_v6 = vpop.xlane.xlu0 %45 }
  0x9b   :  { %v47_v7 = vadd.f32 %v46_v6, %v42_v5 }
  0x9d   :  { %49 = vst.msk [vmem:[%s140_s3] sm:$0xff] %vm31_vm0, %v47_v7 }
  0xa4   :  { %v53_v9 = vld [vmem:[%s140_s3] sm:$0xff] }
  0xa5   :  { %v56_v10 = vadd.f32 %v55_v8, %v53_v9 }
  0xa7   :  { %57 = vst.msk [vmem:[%s140_s3] sm:$0xff] %vm31_vm0, %v56_v10 }
  0xa8   :  { %62 = vsyncpa [#allocation4], 1 }

</bundles_post_ra>
